<compile_context>
chip_gen: v7x
topology: tpu7x:2x2x1
jax: 0.10.0
libtpu: 0.0.40
codegen_flags: <defaults>
</compile_context>

<pallas_src>
import functools

import numpy as np
import jax
import jax.numpy as jnp
from jax import lax
from jax.experimental import pallas as pl
from jax.experimental.pallas import tpu as pltpu

PI = float(np.pi)


def _palais_kernel(z_ref, wp_ref, wq_ref, b_ref, y_ref, det_ref, *, n):
    two_n = 2 * n

    z = z_ref[...]                       # (2n, TK): row c*n+(i-1) = i * x_c
    s = jnp.sin(PI * z)                  # sin(pi i x_c)
    c = jnp.cos(PI * z)                  # cos(pi i x_c)

    # Double-angle features (all constant factors live in the packed weights):
    #   sin(2 pi i x_c) = 2 * P,   cos(2 pi i x_c) = 1 - 2 * Q
    P = s * c
    Q = s * s

    # Single fused contraction over the Fourier order m.  The cross-component
    # argument swap, the 1/i and 1/m normalizations and the 2*pi*m derivative
    # scalings are all baked into wp / wq / b by the wrapper.
    #   rows [0, 2n)  -> g' (drives B@w and the diagonal Jacobian terms)
    #   rows [2n, 4n) -> h' (drives the off-diagonal Jacobian terms)
    gh = (jnp.dot(wp_ref[...], P, preferred_element_type=jnp.float32)
          + jnp.dot(wq_ref[...], Q, preferred_element_type=jnp.float32)
          + b_ref[...])
    g = gh[0:two_n, :]                   # (2n, TK)
    h = gh[two_n:2 * two_n, :]           # (2n, TK)

    # pi * i * cos(pi i x_c)  (the 1/i of the basis is already inside g'/h').
    r = lax.broadcasted_iota(jnp.int32, (two_n, 1), 0)
    i_col = (r - jnp.where(r >= n, n, 0) + 1).astype(jnp.float32)
    pc = (PI * i_col) * c

    pb = s * g      # -> B @ w          (per component, per order i)
    pa = pc * g     # -> A[c, c]
    po = s * h      # -> A[c, 1-c]

    # Row-block reduction over the Fourier order i, done on the MXU with a
    # constant (2, 2n) component-selection matrix  [ones(n) 0 ; 0 ones(n)].
    row = lax.broadcasted_iota(jnp.int32, (2, two_n), 0)
    col = lax.broadcasted_iota(jnp.int32, (2, two_n), 1)
    R = ((col >= n).astype(jnp.int32) == row).astype(jnp.float32)

    bw = jnp.dot(R, pb, preferred_element_type=jnp.float32)   # (2, TK): B@w
    aa = jnp.dot(R, pa, preferred_element_type=jnp.float32)   # [A00; A11]
    ao = jnp.dot(R, po, preferred_element_type=jnp.float32)   # [A01; A10]

    # z rows 0 and n are exactly 1*x0 and 1*x1.
    y_ref[0:1, :] = z[0:1, :] + bw[0:1, :]
    y_ref[1:2, :] = z[n:n + 1, :] + bw[1:2, :]
    det_ref[...] = ((1.0 + aa[0:1, :]) * (1.0 + aa[1:2, :])
                    - ao[0:1, :] * ao[1:2, :])


def _round_up(a, b):
    return (a + b - 1) // b * b


def _cdiv(a, b):
    return -(-a // b)


def _pack_weights(weights, n):
    """Fold every constant of the Palais basis / Jacobian into 3 small arrays."""
    N = 2 * n * n + n

    def split(w):
        return (w[:n],
                w[n:n + n * n].reshape(n, n),      # sin-block weights [i, m]
                w[n + n * n:].reshape(n, n))       # cos-block weights [i, m]

    wl0, ws0, wc0 = split(weights[:N])
    wl1, ws1, wc1 = split(weights[N:])

    ivec = jnp.arange(1, n + 1, dtype=jnp.float32)
    iinv = (1.0 / ivec)[:, None]                   # row scaling (order i)
    minv = (1.0 / ivec)[None, :]                   # column scaling (order m)
    Z = jnp.zeros((n, n), jnp.float32)

    # Column halves of the kernel's P/Q stacks are [comp-0 | comp-1]; each
    # component's weight block sits in the *other* half (argument swap folded).
    gp0 = jnp.concatenate([Z, 2.0 * iinv * ws0 * minv], axis=1)
    gp1 = jnp.concatenate([2.0 * iinv * ws1 * minv, Z], axis=1)
    hp0 = jnp.concatenate([Z, -4.0 * PI * iinv * wc0], axis=1)
    hp1 = jnp.concatenate([-4.0 * PI * iinv * wc1, Z], axis=1)
    wp = jnp.concatenate([gp0, gp1, hp0, hp1], axis=0)            # (4n, 2n)

    gq0 = jnp.concatenate([Z, -2.0 * iinv * wc0 * minv], axis=1)
    gq1 = jnp.concatenate([-2.0 * iinv * wc1 * minv, Z], axis=1)
    hq0 = jnp.concatenate([Z, -4.0 * PI * iinv * ws0], axis=1)
    hq1 = jnp.concatenate([-4.0 * PI * iinv * ws1, Z], axis=1)
    wq = jnp.concatenate([gq0, gq1, hq0, hq1], axis=0)            # (4n, 2n)

    bg0 = (wl0 + (wc0 * minv).sum(axis=1)) / ivec
    bg1 = (wl1 + (wc1 * minv).sum(axis=1)) / ivec
    bh0 = (2.0 * PI * ws0.sum(axis=1)) / ivec
    bh1 = (2.0 * PI * ws1.sum(axis=1)) / ivec
    bias = jnp.concatenate([bg0, bg1, bh0, bh1])[:, None]         # (4n, 1)
    return wp, wq, bias


def palais_forward(x, weights, n, tk=2048):
    """Pallas implementation of PalaisLayer.forward."""
    K = x.shape[0]
    N = 2 * n * n + n
    assert x.shape == (K, 2)
    assert weights.shape == (2 * N,)
    x = x.astype(jnp.float32)
    weights = weights.astype(jnp.float32)

    wp, wq, bias = _pack_weights(weights, n)

    # Lane-dense trig-argument block z[c*n+i-1, k] = i * x[k, c], built once by
    # cheap XLA ops so the kernel never constructs / copies sublane stacks of x.
    ivec = jnp.arange(1, n + 1, dtype=jnp.float32)[:, None]       # (n, 1)
    xT = x.T                                                      # (2, K)
    z = jnp.concatenate([ivec * xT[0:1, :], ivec * xT[1:2, :]], axis=0)  # (2n, K)

    # Tile selection: large lane tiles amortize the ~0.35us/step overhead; keep
    # >= 2 grid steps when K allows so the v7x megacore can shard the grid.
    k128 = _round_up(max(K, 1), 128)
    tk_eff = min(max(128, _round_up(tk, 128)), k128)
    if k128 >= 256 and _cdiv(k128, tk_eff) < 2:
        tk_eff = _round_up(_cdiv(k128, 2), 128)
    Kp = _round_up(k128, tk_eff)
    z = jnp.pad(z, ((0, 0), (0, Kp - K)))

    kernel = functools.partial(_palais_kernel, n=n)
    y_t, det_t = pl.pallas_call(
        kernel,
        out_shape=(jax.ShapeDtypeStruct((2, Kp), jnp.float32),
                   jax.ShapeDtypeStruct((1, Kp), jnp.float32)),
        grid_spec=pltpu.PrefetchScalarGridSpec(
            num_scalar_prefetch=0,
            grid=(Kp // tk_eff,),
            in_specs=[
                pl.BlockSpec((2 * n, tk_eff), lambda i: (0, i)),
                pl.BlockSpec((4 * n, 2 * n), lambda i: (0, 0)),   # resident
                pl.BlockSpec((4 * n, 2 * n), lambda i: (0, 0)),   # resident
                pl.BlockSpec((4 * n, 1), lambda i: (0, 0)),       # resident
            ],
            out_specs=[
                pl.BlockSpec((2, tk_eff), lambda i: (0, i)),
                pl.BlockSpec((1, tk_eff), lambda i: (0, i)),
            ],
        ),
        compiler_params=pltpu.CompilerParams(
            dimension_semantics=("parallel",)),
    )(z, wp, wq, bias)
    return y_t[:, :K].T, det_t[:, :K].T


def palais_reference(x, weights, n):
    """Pure-JAX transliteration of the PyTorch forward (for verification)."""
    K = x.shape[0]
    N = 2 * n * n + n
    nvec = jnp.arange(1, n + 1, dtype=jnp.float32)
    z = x[:, :, None] * nvec                                 # (K, 2, n)
    S1 = jnp.sin(PI * z) / nvec
    S2 = jnp.sin(2 * PI * z)[:, ::-1, :] / nvec
    C1 = jnp.cos(PI * z) / nvec
    C2 = jnp.cos(2 * PI * z)[:, ::-1, :] / nvec
    up = lambda a: jnp.repeat(a, n, axis=-1)                 # nearest upsample x n
    rep = lambda a: jnp.tile(a, (1, 1, n))                   # torch .repeat(1,1,n)
    T2 = up(S1) * rep(S2)
    T3 = up(S1) * rep(C2)
    B = jnp.zeros((K, 2, 2 * N), jnp.float32)
    B = B.at[:, 0, :n].set(S1[:, 0, :])
    B = B.at[:, 1, N:N + n].set(S1[:, 1, :])
    B = B.at[:, 0, n:n + n * n].set(T2[:, 0, :])
    B = B.at[:, 1, N + n:N + n + n * n].set(T2[:, 1, :])
    B = B.at[:, 0, n + n * n:N].set(T3[:, 0, :])
    B = B.at[:, 1, N + n + n * n:].set(T3[:, 1, :])
    T11 = up(nvec * PI * C1) * rep(S2)
    T12 = up(S1) * rep(2 * PI * nvec * C2)
    T21 = up(nvec * PI * C1) * rep(C2)
    T22 = up(S1) * rep(-2 * PI * nvec * S2)
    D = jnp.zeros((K, 2, 2, 2 * N), jnp.float32)
    D = D.at[:, 0, 0, :n].set(nvec * PI * C1[:, 0, :])
    D = D.at[:, 1, 1, N:N + n].set(nvec * PI * C1[:, 1, :])
    D = D.at[:, 0, 0, n:n + n * n].set(T11[:, 0, :])
    D = D.at[:, 0, 1, n:n + n * n].set(T12[:, 0, :])
    D = D.at[:, 1, 1, N + n:N + n + n * n].set(T11[:, 1, :])
    D = D.at[:, 1, 0, N + n:N + n + n * n].set(T12[:, 1, :])
    D = D.at[:, 0, 0, n + n * n:N].set(T21[:, 0, :])
    D = D.at[:, 0, 1, n + n * n:N].set(T22[:, 0, :])
    D = D.at[:, 1, 1, N + n + n * n:].set(T21[:, 1, :])
    D = D.at[:, 1, 0, N + n + n * n:].set(T22[:, 1, :])
    A = jnp.einsum('kijn,n->kij', D, weights)
    Bw = jnp.einsum('kin,n->ki', B, weights)
    M = jnp.eye(2, dtype=jnp.float32)[None] + A
    det = (M[:, 0, 0] * M[:, 1, 1] - M[:, 1, 0] * M[:, 0, 1])[:, None]
    return x + Bw, det


# TODO(synk): PalaisLayer.project / batch_linear / batch_quadratic / batch_trace
# are a training-time projection utility and are not part of forward(); not ported.

if __name__ == "__main__":
    n = 4                       # Fourier order
    N = 2 * n * n + n           # 36

    key = jax.random.PRNGKey(0)
    kx, kw, kx2 = jax.random.split(key, 3)
    # Module default init_scale=0.0 gives zero weights (trivial identity map);
    # use a small nonzero deterministic init so the kernel is exercised.
    weights = 0.1 * jax.random.normal(kw, (2 * N,), dtype=jnp.float32)

    # Small single-tile case.
    K = 16
    x = jax.random.uniform(kx, (K, 2), dtype=jnp.float32)
    y, det = palais_forward(x, weights, n)
    jax.block_until_ready((y, det))
    y_ref, det_ref = palais_reference(x, weights, n)
    assert y.shape == (K, 2) and det.shape == (K, 1)
    assert jnp.allclose(y, y_ref, atol=1e-4, rtol=1e-4)
    assert jnp.allclose(det, det_ref, atol=1e-4, rtol=1e-4)

    # Multi-tile case: exercises padding and the >=2 parallel-grid-steps path.
    K2 = 300
    x2 = jax.random.uniform(kx2, (K2, 2), dtype=jnp.float32)
    y2, det2 = palais_forward(x2, weights, n)
    jax.block_until_ready((y2, det2))
    y2_ref, det2_ref = palais_reference(x2, weights, n)
    assert y2.shape == (K2, 2) and det2.shape == (K2, 1)
    assert jnp.allclose(y2, y2_ref, atol=1e-4, rtol=1e-4)
    assert jnp.allclose(det2, det2_ref, atol=1e-4, rtol=1e-4)

    print("KERNEL_OK")
</pallas_src>

<mosaic_0001>
module attributes {stable_mosaic.version = 11 : i64} {
  func.func @_palais_kernel(%arg0: i32, %arg1: memref<8x128xf32, #tpu.memory_space<vmem>>, %arg2: memref<16x8xf32, #tpu.memory_space<vmem>>, %arg3: memref<16x8xf32, #tpu.memory_space<vmem>>, %arg4: memref<16x1xf32, #tpu.memory_space<vmem>>, %arg5: memref<2x128xf32, #tpu.memory_space<vmem>>, %arg6: memref<1x128xf32, #tpu.memory_space<vmem>>) attributes {dimension_semantics = [#tpu.dimension_semantics<parallel>], iteration_bounds = array<i64: 1>, scalar_prefetch = 0 : i64, scratch_operands = 0 : i64, tpu.core_type = #tpu.core_type<tc>, window_params = [{transform_indices = @transform_0, window_bounds = array<i64: 8, 128>}, {pipeline_mode = #tpu.pipeline_mode<synchronous>, transform_indices = @transform_1, window_bounds = array<i64: 16, 8>}, {pipeline_mode = #tpu.pipeline_mode<synchronous>, transform_indices = @transform_2, window_bounds = array<i64: 16, 8>}, {pipeline_mode = #tpu.pipeline_mode<synchronous>, transform_indices = @transform_3, window_bounds = array<i64: 16, 1>}, {transform_indices = @transform_4, window_bounds = array<i64: 2, 128>}, {transform_indices = @transform_5, window_bounds = array<i64: 1, 128>}]} {
    %c0 = arith.constant 0 : index
    %c0_0 = arith.constant 0 : index
    %0 = vector.load %arg1[%c0, %c0_0] : memref<8x128xf32, #tpu.memory_space<vmem>>, vector<8x128xf32>
    %cst = arith.constant 3.14159274 : f32
    %1 = vector.broadcast %cst : f32 to vector<8x128xf32>
    %2 = arith.mulf %1, %0 : vector<8x128xf32>
    %3 = math.sin %2 : vector<8x128xf32>
    %cst_1 = arith.constant 3.14159274 : f32
    %4 = vector.broadcast %cst_1 : f32 to vector<8x128xf32>
    %5 = arith.mulf %4, %0 : vector<8x128xf32>
    %6 = math.cos %5 : vector<8x128xf32>
    %7 = arith.mulf %3, %6 : vector<8x128xf32>
    %8 = arith.mulf %3, %3 : vector<8x128xf32>
    %c0_2 = arith.constant 0 : index
    %c0_3 = arith.constant 0 : index
    %9 = vector.load %arg2[%c0_2, %c0_3] : memref<16x8xf32, #tpu.memory_space<vmem>>, vector<16x8xf32>
    %cst_4 = arith.constant dense<0.000000e+00> : vector<16x128xf32>
    %10 = tpu.matmul %9, %7, %cst_4 {dimension_numbers = #tpu.dot_dimension_numbers<[1], [0], [0], [1], [0, 0, 1, 1], [], []>} : vector<16x8xf32>, vector<8x128xf32>, vector<16x128xf32> -> vector<16x128xf32>
    %c0_5 = arith.constant 0 : index
    %c0_6 = arith.constant 0 : index
    %11 = vector.load %arg3[%c0_5, %c0_6] : memref<16x8xf32, #tpu.memory_space<vmem>>, vector<16x8xf32>
    %cst_7 = arith.constant dense<0.000000e+00> : vector<16x128xf32>
    %12 = tpu.matmul %11, %8, %cst_7 {dimension_numbers = #tpu.dot_dimension_numbers<[1], [0], [0], [1], [0, 0, 1, 1], [], []>} : vector<16x8xf32>, vector<8x128xf32>, vector<16x128xf32> -> vector<16x128xf32>
    %13 = arith.addf %10, %12 : vector<16x128xf32>
    %c0_8 = arith.constant 0 : index
    %c0_9 = arith.constant 0 : index
    %14 = vector.load %arg4[%c0_8, %c0_9] : memref<16x1xf32, #tpu.memory_space<vmem>>, vector<16x1xf32>
    %15 = vector.broadcast %14 : vector<16x1xf32> to vector<16x128xf32>
    %16 = arith.addf %13, %15 : vector<16x128xf32>
    %17 = vector.extract_strided_slice %16 {offsets = [0, 0], sizes = [8, 128], strides = [1, 1]} : vector<16x128xf32> to vector<8x128xf32>
    %18 = vector.extract_strided_slice %16 {offsets = [8, 0], sizes = [8, 128], strides = [1, 1]} : vector<16x128xf32> to vector<8x128xf32>
    %19 = tpu.iota {dimensions = array<i32: 0>} : vector<8x1xi32>
    %c4_i32 = arith.constant 4 : i32
    %20 = vector.broadcast %c4_i32 : i32 to vector<8x1xi32>
    %21 = arith.cmpi sge, %19, %20 : vector<8x1xi32>
    %c4_i32_10 = arith.constant 4 : i32
    %c0_i32 = arith.constant 0 : i32
    %22 = vector.broadcast %c4_i32_10 : i32 to vector<8x1xi32>
    %23 = vector.broadcast %c0_i32 : i32 to vector<8x1xi32>
    %24 = arith.select %21, %22, %23 : vector<8x1xi1>, vector<8x1xi32>
    %25 = arith.subi %19, %24 : vector<8x1xi32>
    %c1_i32 = arith.constant 1 : i32
    %26 = vector.broadcast %c1_i32 : i32 to vector<8x1xi32>
    %27 = arith.addi %25, %26 : vector<8x1xi32>
    %28 = arith.sitofp %27 : vector<8x1xi32> to vector<8x1xf32>
    %cst_11 = arith.constant 3.14159274 : f32
    %29 = vector.broadcast %cst_11 : f32 to vector<8x1xf32>
    %30 = arith.mulf %29, %28 : vector<8x1xf32>
    %31 = vector.broadcast %30 : vector<8x1xf32> to vector<8x128xf32>
    %32 = arith.mulf %31, %6 : vector<8x128xf32>
    %33 = arith.mulf %3, %17 : vector<8x128xf32>
    %34 = arith.mulf %32, %17 : vector<8x128xf32>
    %35 = arith.mulf %3, %18 : vector<8x128xf32>
    %36 = tpu.iota {dimensions = array<i32: 0>} : vector<2x8xi32>
    %37 = tpu.iota {dimensions = array<i32: 1>} : vector<2x8xi32>
    %c4_i32_12 = arith.constant 4 : i32
    %38 = vector.broadcast %c4_i32_12 : i32 to vector<2x8xi32>
    %39 = arith.cmpi sge, %37, %38 : vector<2x8xi32>
    %40 = arith.extui %39 : vector<2x8xi1> to vector<2x8xi32>
    %41 = arith.cmpi eq, %40, %36 : vector<2x8xi32>
    %42 = arith.extui %41 : vector<2x8xi1> to vector<2x8xi32>
    %43 = arith.sitofp %42 : vector<2x8xi32> to vector<2x8xf32>
    %cst_13 = arith.constant dense<0.000000e+00> : vector<2x128xf32>
    %44 = tpu.matmul %43, %33, %cst_13 {dimension_numbers = #tpu.dot_dimension_numbers<[1], [0], [0], [1], [0, 0, 1, 1], [], []>} : vector<2x8xf32>, vector<8x128xf32>, vector<2x128xf32> -> vector<2x128xf32>
    %cst_14 = arith.constant dense<0.000000e+00> : vector<2x128xf32>
    %45 = tpu.matmul %43, %34, %cst_14 {dimension_numbers = #tpu.dot_dimension_numbers<[1], [0], [0], [1], [0, 0, 1, 1], [], []>} : vector<2x8xf32>, vector<8x128xf32>, vector<2x128xf32> -> vector<2x128xf32>
    %cst_15 = arith.constant dense<0.000000e+00> : vector<2x128xf32>
    %46 = tpu.matmul %43, %35, %cst_15 {dimension_numbers = #tpu.dot_dimension_numbers<[1], [0], [0], [1], [0, 0, 1, 1], [], []>} : vector<2x8xf32>, vector<8x128xf32>, vector<2x128xf32> -> vector<2x128xf32>
    %47 = vector.extract_strided_slice %0 {offsets = [0, 0], sizes = [1, 128], strides = [1, 1]} : vector<8x128xf32> to vector<1x128xf32>
    %48 = vector.extract_strided_slice %44 {offsets = [0, 0], sizes = [1, 128], strides = [1, 1]} : vector<2x128xf32> to vector<1x128xf32>
    %49 = arith.addf %47, %48 : vector<1x128xf32>
    %c0_16 = arith.constant 0 : index
    %c0_17 = arith.constant 0 : index
    %50 = vector.load %arg5[%c0_16, %c0_17] : memref<2x128xf32, #tpu.memory_space<vmem>>, vector<1x128xf32>
    tpu.vector_store %arg5[%c0_16, %c0_17], %49 {strides = array<i32>} : memref<2x128xf32, #tpu.memory_space<vmem>>, vector<1x128xf32>,
    %51 = vector.extract_strided_slice %0 {offsets = [4, 0], sizes = [1, 128], strides = [1, 1]} : vector<8x128xf32> to vector<1x128xf32>
    %52 = vector.extract_strided_slice %44 {offsets = [1, 0], sizes = [1, 128], strides = [1, 1]} : vector<2x128xf32> to vector<1x128xf32>
    %53 = arith.addf %51, %52 : vector<1x128xf32>
    %c1 = arith.constant 1 : index
    %c0_18 = arith.constant 0 : index
    %54 = vector.load %arg5[%c1, %c0_18] : memref<2x128xf32, #tpu.memory_space<vmem>>, vector<1x128xf32>
    tpu.vector_store %arg5[%c1, %c0_18], %53 {strides = array<i32>} : memref<2x128xf32, #tpu.memory_space<vmem>>, vector<1x128xf32>,
    %55 = vector.extract_strided_slice %45 {offsets = [0, 0], sizes = [1, 128], strides = [1, 1]} : vector<2x128xf32> to vector<1x128xf32>
    %cst_19 = arith.constant 1.000000e+00 : f32
    %56 = vector.broadcast %cst_19 : f32 to vector<1x128xf32>
    %57 = arith.addf %56, %55 : vector<1x128xf32>
    %58 = vector.extract_strided_slice %45 {offsets = [1, 0], sizes = [1, 128], strides = [1, 1]} : vector<2x128xf32> to vector<1x128xf32>
    %cst_20 = arith.constant 1.000000e+00 : f32
    %59 = vector.broadcast %cst_20 : f32 to vector<1x128xf32>
    %60 = arith.addf %59, %58 : vector<1x128xf32>
    %61 = arith.mulf %57, %60 : vector<1x128xf32>
    %62 = vector.extract_strided_slice %46 {offsets = [0, 0], sizes = [1, 128], strides = [1, 1]} : vector<2x128xf32> to vector<1x128xf32>
    %63 = vector.extract_strided_slice %46 {offsets = [1, 0], sizes = [1, 128], strides = [1, 1]} : vector<2x128xf32> to vector<1x128xf32>
    %64 = arith.mulf %62, %63 : vector<1x128xf32>
    %65 = arith.subf %61, %64 : vector<1x128xf32>
    %c0_21 = arith.constant 0 : index
    %c0_22 = arith.constant 0 : index
    %66 = vector.load %arg6[%c0_21, %c0_22] : memref<1x128xf32, #tpu.memory_space<vmem>>, vector<1x128xf32>
    tpu.vector_store %arg6[%c0_21, %c0_22], %65 {strides = array<i32>} : memref<1x128xf32, #tpu.memory_space<vmem>>, vector<1x128xf32>,
    return
  }
  func.func @transform_0(%arg0: i32) -> (i32, i32) {
    %c0_i32 = arith.constant 0 : i32
    %c0_i32_0 = arith.constant 0 : i32
    return %c0_i32, %arg0 : i32, i32
  }
  func.func @transform_1(%arg0: i32) -> (i32, i32) {
    %c0_i32 = arith.constant 0 : i32
    %c0_i32_0 = arith.constant 0 : i32
    %c0_i32_1 = arith.constant 0 : i32
    return %c0_i32, %c0_i32_0 : i32, i32
  }
  func.func @transform_2(%arg0: i32) -> (i32, i32) {
    %c0_i32 = arith.constant 0 : i32
    %c0_i32_0 = arith.constant 0 : i32
    %c0_i32_1 = arith.constant 0 : i32
    return %c0_i32, %c0_i32_0 : i32, i32
  }
  func.func @transform_3(%arg0: i32) -> (i32, i32) {
    %c0_i32 = arith.constant 0 : i32
    %c0_i32_0 = arith.constant 0 : i32
    %c0_i32_1 = arith.constant 0 : i32
    return %c0_i32, %c0_i32_0 : i32, i32
  }
  func.func @transform_4(%arg0: i32) -> (i32, i32) {
    %c0_i32 = arith.constant 0 : i32
    %c0_i32_0 = arith.constant 0 : i32
    return %c0_i32, %arg0 : i32, i32
  }
  func.func @transform_5(%arg0: i32) -> (i32, i32) {
    %c0_i32 = arith.constant 0 : i32
    %c0_i32_0 = arith.constant 0 : i32
    return %c0_i32, %arg0 : i32, i32
  }
}

</mosaic_0001>

<bundles_post_ra>
// kernel: tpu_custom_call.1
= control target key start
LH: loop header
LB: loop body
LE: loop exit
PB: predicated region body
PF: predicated region fallthrough
CT: control target
= control target key end

     0   :  { %11 = vsyncpa [#allocation3], 0  ;;  %vm236_vm0 = vcmask 64512   ;;  %v814_v6 = vmov 0   ;;  %s939_s0 = inlined_call_operand.vmem [shape: f32[8,128], index: 0, kind: input, shape index: {}]   ;;  %s940_s1 = inlined_call_operand.vmem [shape: f32[16,8], index: 1, kind: input, shape index: {}]   ;;  %s941_s2 = inlined_call_operand.vmem [shape: f32[16,8], index: 2, kind: input, shape index: {}]   ;;  %s942_s3 = inlined_call_operand.vmem [shape: f32[16,1], index: 3, kind: input, shape index: {}]   ;;  %s943_s4 = inlined_call_operand.hbm [shape: f32[2,128], index: 4, kind: output, shape index: {0}]   ;;  %s944_s5 = inlined_call_operand.hbm [shape: f32[1,128], index: 5, kind: output, shape index: {1}]  }
   0x1   :  { %v858_v0 = vld [vmem:[%s939_s0] sm:$0xff]  ;;  %761 = vset.pattern.permute.xlu0 %v814_v6 }
   0x2   :  { %v234_v1 = vld [vmem:[%s941_s2] sm:$0xff]  ;;  %v864_v2 = vmul.f32 3.1415927, %v858_v0 }
   0x3   :  { %721 = vmatprep.mubr.msk.f32.mxu0 %vm236_vm0, %v234_v1  ;;  %v399_v4 = vld [vmem:[%s942_s3] sm:$0xff] }
   0x4   :  { %v26_v3 = vand.u32 2139095040, %v864_v2  ;;  %v23_v7 = vand.u32 2147483647, %v864_v2  ;;  %403 = vperm.xlu0 %761, %v399_v4  }
   0x6   :  { %v27_v5 = vshrl.u32 %v26_v3, 23 }
   0x7   :  { %12 = vsyncpa [#allocation5], 0  ;;  %v400_v9 = vld [vmem:[%s942_s3 + $0x8] sm:$0xff]  ;;  %v30_v11 = vand.u32 8388607, %v23_v7  ;;  %vm25_vm8 = vcmp.lt.s32.totalorder %v864_v2, 0 }
   0x8   :  { %v691_v8 = vadd.s32 4294967169, %v27_v5  ;;  %408 = vperm.xlu0 %761, %v400_v9   ;;  %v815_v17 = vmov 683565275   ;;  %v816_v19 = vmov 2475754826  }
   0x9   :  { %v31_v14 = vor.u32 8388608, %v30_v11  ;;  %v817_v21 = vmov 2131351028   ;;  %v818_v23 = vmov 2102212464  }
   0xa   :  { %v33_v10 = vadd.s32 1, %v691_v8  ;;  %v819_v25 = vmov 920167782   ;;  %v820_v32 = vmov 1326507024  }
   0xb   :  { %v71_v34 = vshll.u32 %v31_v14, 8  ;;  %vm24_vm9 = vcmp.le.f32.partialorder %v23_v7, 0.7853982 }
   0xc   :  { %vm34_vm1 = vcmp.gt.s32.totalorder %v33_v10, 0 }
   0xd   :  { %v35_v12 = vsel %vm34_vm1, %v33_v10, 0  ;;  %vm115_vm1 = vweird.f32 %v864_v2 }
   0xe   :  { %v37_v13 = vand.u32 31, %v35_v12  ;;  %v36_v15 = vshrl.u32 %v35_v12, 5 }
  0x10   :  { %v38_v16 = vsub.s32 32, %v37_v13  ;;  %v40_v18 = vshll.u32 %v815_v17, %v37_v13  ;;  %v43_v20 = vshll.u32 %v816_v19, %v37_v13  ;;  %v46_v22 = vshll.u32 %v817_v21, %v37_v13 }
  0x11   :  { %v49_v24 = vshll.u32 %v818_v23, %v37_v13  ;;  %v52_v26 = vshll.u32 %v819_v25, %v37_v13  ;;  %vm55_vm2 = vcmp.lt.s32.totalorder %v36_v15, 1  ;;  %vm58_vm3 = vcmp.lt.s32.totalorder %v36_v15, 4 }
  0x12   :  { %v39_v27 = vshrl.u32 %v815_v17, %v38_v16  ;;  %v41_v28 = vshrl.u32 %v816_v19, %v38_v16  ;;  %v44_v29 = vshrl.u32 %v817_v21, %v38_v16  ;;  %v47_v30 = vshrl.u32 %v818_v23, %v38_v16 }
  0x13   :  { %v50_v31 = vshrl.u32 %v819_v25, %v38_v16  ;;  %v53_v33 = vshrl.u32 %v820_v32, %v38_v16  ;;  %vm56_vm4 = vcmp.lt.s32.totalorder %v36_v15, 2  ;;  %vm57_vm5 = vcmp.lt.s32.totalorder %v36_v15, 3 }
  0x14   :  { %v42_v35 = vor.u32 %v41_v28, %v40_v18  ;;  %v45_v36 = vor.u32 %v44_v29, %v43_v20  ;;  %v48_v37 = vor.u32 %v47_v30, %v46_v22 }
  0x15   :  { %v51_v38 = vor.u32 %v50_v31, %v49_v24  ;;  %v54_v39 = vor.u32 %v53_v33, %v52_v26 }
  0x16   :  { %v59_v40 = vsel %vm55_vm2, %v39_v27, %v42_v35  ;;  %v60_v41 = vsel %vm58_vm3, %v48_v37, 2102212464  ;;  %v63_v42 = vsel %vm55_vm2, %v42_v35, %v45_v36  ;;  %v67_v43 = vsel %vm55_vm2, %v45_v36, %v48_v37 }
  0x17   :  { %v61_v44 = vsel %vm57_vm5, %v45_v36, %v60_v41  ;;  %v64_v45 = vsel %vm58_vm3, %v51_v38, 920167782  ;;  %v68_v46 = vsel %vm58_vm3, %v54_v39, 1326507024  ;;  %vm822_vm2 = vmmov 0  }
  0x18   :  { %v65_v47 = vsel %vm57_vm5, %v48_v37, %v64_v45  ;;  %v69_v48 = vsel %vm57_vm5, %v51_v38, %v68_v46  ;;  %v62_v49 = vsel %vm56_vm4, %v59_v40, %v61_v44  ;;  %v232_v44 = vld [vmem:[%s940_s1] sm:$0xff]  ;;  %v821_v45 = vmov 0.0  }
  0x19   :  { %v66_v50 = vsel %vm56_vm4, %v63_v42, %v65_v47  ;;  %v70_v51 = vsel %vm56_vm4, %v67_v43, %v69_v48  ;;  %v78_v56 = vmul.u32 %v71_v34, %v62_v49  ;;  %v235_v43 = vld [vmem:[%s941_s2 + $0x8] sm:$0xff]  ;;  %729 = vmatprep.subr.mxu1 %v821_v45  ;;  %731 = vmatprep.mubr.msk.f32.mxu1 %vm822_vm2, %v821_v45  ;;  %v413_v46 = vlaneseq }
  0x1a   :  { %v878_v52 = vmul.u32.u64.low %v71_v34, %v70_v51  ;;  %v879_v53 = vmul.u32.u64.high %v71_v34, %v70_v51, %v878_v52  ;;  %v881_v54 = vmul.u32.u64.low %v71_v34, %v66_v50  ;;  %v882_v55 = vmul.u32.u64.high %v71_v34, %v66_v50, %v881_v54 }
  0x1b   :  { %v414_v47 = vshrl.u32 %v413_v46, 7  ;;  %v426_v51 = vand.u32 127, %v413_v46 }
  0x1c   :  { %vm80_vm6 = vc.u32 %v879_v53, %v881_v54  ;;  %v81_v57 = vadd.s32 1, %v882_v55  ;;  %v79_v8 = vadd.s32 %v881_v54, %v879_v53 }
  0x1d   :  { %vm415_vm3 = vcmp.ge.s32.totalorder %v414_v47, 4  ;;  %vm427_vm4 = vcmp.ge.s32.totalorder %v426_v51, 4 }
  0x1e   :  { %v82_v58 = vsel %vm80_vm6, %v81_v57, %v882_v55  ;;  %v416_v48 = vsel %vm415_vm3, 4, %v814_v6  ;;  %v428_v55 = vsel %vm427_vm4, 1, %v814_v6 }
  0x1f   :  { %v83_v59 = vadd.s32 %v82_v58, %v78_v56  ;;  %v417_v49 = vsub.s32 %v414_v47, %v416_v48  ;;  %vm429_vm5 = vcmp.eq.s32.totalorder %v428_v55, %v414_v47 }
  0x21   :  { %v84_v60 = vadd.s32 536870912, %v83_v59  ;;  %v418_v50 = vadd.s32 1, %v417_v49 }
  0x23   :  { %v85_v61 = vshrl.u32 %v84_v60, 30  ;;  %v419_v52 = vcvt.s32.f32 %v418_v50 }
  0x25   :  { %v86_v62 = vshll.u32 %v85_v61, 30  ;;  %v109_v20 = vsub.s32 4, %v85_v61  ;;  %v420_v54 = vmul.f32 3.1415927, %v419_v52 }
  0x27   :  { %v87_v63 = vsub.s32 %v83_v59, %v86_v62  ;;  %v110_v23 = vsel %vm25_vm8, %v109_v20, %v85_v61 }
  0x28   :  { %v112_v26 = vsel %vm24_vm9, 0, %v110_v23 }
  0x29   :  { %v89_v1 = vsub.s32 0, %v87_v63  ;;  %v116_v27 = vadd.s32 3, %v112_v26  ;;  %v220_v29 = vand.u32 3, %v112_v26 }
  0x2b   :  { %v692_v3 = vmin.u32 %v89_v1, %v87_v63  ;;  %v117_v28 = vand.u32 3, %v116_v27  ;;  %vm225_vm11 = vcmp.eq.s32.totalorder %v220_v29, 2  ;;  %vm222_vm13 = vcmp.eq.s32.totalorder %v220_v29, 0 }
  0x2c   :  { %vm221_vm15 = vcmp.lt.s32.totalorder %v220_v29, 2 }
  0x2d   :  { %v91_v4 = vclz %v692_v3  ;;  %vm122_vm10 = vcmp.eq.s32.totalorder %v117_v28, 2  ;;  %vm119_vm12 = vcmp.eq.s32.totalorder %v117_v28, 0  ;;  %vm118_vm14 = vcmp.lt.s32.totalorder %v117_v28, 2 }
  0x2e   :  { %v703_v3 = vsel %vm429_vm5, 1.0, %v821_v45 }
  0x2f   :  { %v693_v5 = vadd.s32 4294967294, %v91_v4 }
  0x31   :  { %vm694_vm7 = vcmp.lt.s32.totalorder %v693_v5, 0 }
  0x32   :  { %v94_v9 = vsel %vm694_vm7, 0, %v693_v5 }
  0x33   :  { %v95_v10 = vsub.s32 32, %v94_v9  ;;  %v96_v11 = vshll.u32 %v87_v63, %v94_v9  ;;  %v99_v12 = vsub.s32 4294967266, %v94_v9 }
  0x35   :  { %v97_v13 = vshrl.u32 %v79_v8, %v95_v10  ;;  %v100_v14 = vadd.s32 127, %v99_v12 }
  0x37   :  { %v98_v15 = vor.u32 %v97_v13, %v96_v11  ;;  %v101_v16 = vshll.u32 %v100_v14, 23 }
  0x39   :  { %v102_v17 = vor.u32 4788187, %v101_v16  ;;  %v105_v18 = vcvt.s32.f32 %v98_v15 }
  0x3b   :  { %v103_v19 = vand.u32 2147483647, %v102_v17 }
  0x3d   :  { %v106_v21 = vmul.f32 %v105_v18, %v103_v19 }
  0x3f   :  { %v107_v22 = vxor.u32 2147483648, %v106_v21 }
  0x41   :  { %v108_v24 = vsel %vm25_vm8, %v107_v22, %v106_v21 }
  0x42   :  { %v111_v25 = vsel %vm24_vm9, %v864_v2, %v108_v24  ;;  %v233_v2 = vld [vmem:[%s940_s1 + $0x8] sm:$0xff]  ;;  %s823_s1 = smov [#allocation2]  }
  0x43   :  { %762 = vcosq.f32 %v111_v25  ;;  %s669_s2 = sshll.u32 %s823_s1, 4  ;;  %s670_s2 = int_to_ptr.vmem [resolvable:$true] %s669_s2 }
  0x44   :  { %764 = vsinq.f32 %v111_v25  ;;  %s766_s30 = scalar_lea.vmem %s670_s2, 32  ;;  %p771_p1 = scmp.lt.s32.totalorder %s670_s2, %s670_s2 }
  0x45   :  { %p767_p0 = scmp.ne.s32.totalorder %s670_s2, %s766_s30  ;;  %p772_p2 = scmp.lt.s32.totalorder %s766_s30, %s766_s30 }
  0x47   :  { %p773_p3 = por %p772_p2, %p771_p1 }
  0x49   :  { %p774_p4 = pnand %p773_p3, %p767_p0 }
  0x4d   :  { %v763_v30 = vpop.eup %762 }
  0x4e   :  { %v765_v31 = vpop.eup %764  ;;  %v123_v32 = vxor.u32 2147483648, %v763_v30 }
  0x4f   :  { %v120_v7 = vxor.u32 2147483648, %v765_v31 }
  0x50   :  { %v124_v33 = vsel %vm122_vm10, %v123_v32, %v765_v31  ;;  %v227_v34 = vsel %vm225_vm11, %v123_v32, %v765_v31 }
  0x51   :  { %v121_v35 = vsel %vm119_vm12, %v763_v30, %v120_v7  ;;  %v224_v36 = vsel %vm222_vm13, %v763_v30, %v120_v7 }
  0x52   :  { %v125_v37 = vsel %vm118_vm14, %v121_v35, %v124_v33  ;;  %v228_v38 = vsel %vm221_vm15, %v224_v36, %v227_v34 }
  0x53   :  { %v126_v39 = vsel %vm115_vm1, nan, %v125_v37  ;;  %v229_v40 = vsel %vm115_vm1, nan, %v228_v38 }
  0x54   :  { %v231_v41 = vmul.f32 %v126_v39, %v126_v39  ;;  %v230_v42 = vmul.f32 %v229_v40, %v126_v39  ;;  %v421_v58 = vmul.f32 %v420_v54, %v229_v40 }
  0x56   :  { %719 = vmatprep.subr.mxu0 %v231_v41 }
  0x57   :  { %720 = vmatpush3.msra.mxu0 %v231_v41 }
  0x58   :  { %722 = vmatmul.mubr.msk.f32.vlgmr.msra.gmra.mrb[0].mxu0 %vm236_vm0, %v235_v43  ;;  %724 = vmatprep.subr.mxu0 %v230_v42 }
  0x59   :  { %725 = vmatpush3.msra.mxu0 %v230_v42  ;;  %726 = vmatprep.mubr.msk.f32.mxu0 %vm236_vm0, %v232_v44 }
  0x5a   :  { %739 = vmatprep.subr.mxu0 %v821_v45 }
  0x60   :  { %727 = vmatmul.mubr.msk.f32.vlgmr.msra.gmra.mrb[0].mxu0 %vm236_vm0, %v233_v2 }
  0x61   :  { %741 = vmatprep.mubr.msk.f32.mxu0 %vm822_vm2, %v821_v45 }
  0x83   :  { %v404_v53 = vpop.permute.xlu0 %403 }
  0x87   :  { %v409_v56 = vpop.permute.xlu0 %408 }
 0x133   :  { %v728_v57 = vpop.f32.mrb[0].mxu0 }
 0x134   :  { %v412_v59 = vadd.f32 %v728_v57, %v409_v56  ;;  %v390_v60 = vpop.f32.mrb[1].mxu0 }
 0x135   :  { %v411_v61 = vadd.f32 %v404_v53, %v390_v60 }
 0x136   :  { %v424_v62 = vmul.f32 %v412_v59, %v126_v39 }
 0x137   :  { %v423_v63 = vmul.f32 %v421_v58, %v411_v61  ;;  %v422_v1 = vmul.f32 %v411_v61, %v126_v39 }
 0x138   :  { %740 = vmatpush3.msra.mxu0 %v424_v62 }
 0x139   :  { %730 = vmatpush3.msra.mxu1 %v422_v1  ;;  %742 = vmatmul.mubr.msk.f32.vlgmr.msra.gmra.mrb[2].mxu0 %vm236_vm0, %v703_v3 }
 0x13a   :  { %732 = vmatmul.mubr.msk.f32.vlgmr.msra.gmra.mrb[0].mxu1 %vm236_vm0, %v703_v3  ;;  %734 = vmatprep.subr.mxu1 %v821_v45 }
 0x13b   :  { %735 = vmatpush3.msra.mxu1 %v423_v63  ;;  %736 = vmatprep.mubr.msk.f32.mxu1 %vm822_vm2, %v821_v45 }
 0x13e   :  { %737 = vmatmul.mubr.msk.f32.vlgmr.msra.gmra.mrb[2].mxu1 %vm236_vm0, %v703_v3 }
 0x20c   :  { %v641_v6 = vpop.f32.mrb[2].mxu0 }
 0x20d   :  { %v501_v4 = vpop.f32.mrb[0].mxu1  ;;  %v743_v5 = vpop.f32.mrb[3].mxu0  ;;  %v658_v15 = vrot.slane %v641_v6, 1 }
 0x20e   :  { %v645_v8 = vadd.f32 %v501_v4, %v858_v0  ;;  %v648_v9 = vrot.slane %v501_v4, 5  ;;  %v733_v10 = vpop.f32.mrb[1].mxu1 }
 0x210   :  { %646 = vst [vmem:[#allocation2] sm:$0x1] %v645_v8  ;;  %v650_v11 = vadd.f32 %v648_v9, %v858_v0 }
 0x211   :  { %v571_v12 = vpop.f32.mrb[2].mxu1 }
 0x212   :  { %v652_v13 = vadd.f32 1.0, %v571_v12  ;;  %v738_v14 = vpop.f32.mrb[3].mxu1  ;;  %651 = vst [vmem:[#allocation2 - $0x3] sm:$0x10] %v650_v11 }
 0x213   :  { %777 = shalt.err (!%p774_p4)
}
 0x214   :  { %s778_s8 = scalar_lea.hbm %s943_s4, 32 }
 0x215   :  { %p779_p5 = scmp.ne.s32.totalorder %s943_s4, %s778_s8  ;;  %p782_p6 = scmp.lt.u32.totalorder %s778_s8, %s943_s4 }
 0x217   :  { %p784_p7 = pnand %p782_p6, %p779_p5 }
 0x219   :  { %787 = shalt.err (!%p784_p7)
}
 0x21a   :  { %672 = dma.vmem_to_hbm [thread:$0]  %s670_s2, 32, %s943_s4, [#allocation3]   ;;  %v654_v0 = vrot.slane %v652_v13, 1  ;;  %v660_v17 = vmul.f32 %v658_v15, %v641_v6 }
 0x21b   :  { %s824_s15 = smov [#allocation4]  }
 0x21c   :  { %s679_s16 = sshll.u32 %s824_s15, 4  ;;  %v656_v16 = vmul.f32 %v654_v0, %v652_v13  ;;  %s680_s16 = int_to_ptr.vmem [resolvable:$true] %s679_s16 }
 0x21d   :  { %s788_s17 = scalar_lea.vmem %s680_s16, 16  ;;  %s792_s18 = scalar_lea.vmem %s680_s16, 32 }
 0x21e   :  { %v661_v18 = vsub.f32 %v656_v16, %v660_v17  ;;  %p789_p8 = scmp.ne.s32.totalorder %s680_s16, %s788_s17  ;;  %p793_p9 = scmp.lt.s32.totalorder %s680_s16, %s680_s16 }
 0x21f   :  { %p794_p10 = scmp.lt.s32.totalorder %s792_s18, %s788_s17 }
 0x220   :  { %662 = vst [vmem:[#allocation4] sm:$0x1] %v661_v18 }
 0x221   :  { %p795_p11 = por %p794_p10, %p793_p9 }
 0x223   :  { %p796_p12 = pnand %p795_p11, %p789_p8 }
 0x225   :  { %799 = shalt.err (!%p796_p12)
}
 0x226   :  { %s800_s4 = scalar_lea.hbm %s944_s5, 16 }
 0x227   :  { %p801_p13 = scmp.ne.s32.totalorder %s944_s5, %s800_s4  ;;  %p804_p0 = scmp.lt.u32.totalorder %s800_s4, %s944_s5 }
 0x229   :  { %p806_p1 = pnand %p804_p0, %p801_p13 }
 0x22b   :  { %809 = shalt.err (!%p806_p1)
}
 0x22c   :  { %682 = dma.vmem_to_hbm [thread:$0]  %s680_s16, 16, %s944_s5, [#allocation5]  }
 0x22d   :  { %810 = dma.done.wait [#allocation3], 32  }
 0x22e   :  { %811 = vsyncadd [#allocation3], 4294967264 }
 0x22f   :  { %812 = dma.done.wait [#allocation5], 16  }
 0x230   :  { %813 = vsyncadd [#allocation5], 4294967280 }
 0x231   :  { %689 = vsyncpa [#allocation3], 1 }
 0x232   :  { %690 = vsyncpa [#allocation5], 1 }

</bundles_post_ra>
